<compile_context>
chip_gen: v5e
topology: v5e:2x2
jax: 0.10.0
libtpu: 0.0.40
codegen_flags: <defaults>
</compile_context>

<pallas_src>
import math
import functools

import jax
import jax.numpy as jnp
from jax.experimental import pallas as pl
from jax.experimental.pallas import tpu as pltpu


def _sinusoidal_kernel(pos_ref, out_ref, *, half_dim, embedding_dim,
                       padding_idx, lane_aligned):
    # pos_ref: (TILE, 1) int32   — tile of flattened positions
    # out_ref: (TILE, embedding_dim) out_dtype
    pos = pos_ref[...]                                      # (TILE, 1) int32
    row_mask = (pos != padding_idx).astype(jnp.float32)     # emb[padding_idx,:]=0
    p = pos.astype(jnp.float32)                             # (TILE, 1)

    # Inverse-frequency scale rebuilt in-kernel (a handful of EUP exps ~ free;
    # avoids an extra pipelined input stream).
    neg_scale = -math.log(10000.0) / (half_dim - 1)

    if lane_aligned:
        # half_dim % 128 == 0 and dim even: both halves are full-vreg-aligned
        # column slices -> two unmasked stores, true sin / true cos.
        j = jax.lax.broadcasted_iota(jnp.float32, (1, half_dim), 1)
        freq = jnp.exp(j * neg_scale)                       # (1, half_dim)
        ang = p * freq                                      # (TILE, half_dim)
        out_ref[:, :half_dim] = (jnp.sin(ang) * row_mask).astype(out_ref.dtype)
        out_ref[:, half_dim:] = (jnp.cos(ang) * row_mask).astype(out_ref.dtype)
    else:
        # Lane-dense path: one full-width store. Column d carries
        #   sin(p * freq[d])             for d <  half_dim
        #   cos(p * freq[d - half_dim])  for half_dim <= d < 2*half_dim
        #   0                            for d == 2*half_dim (odd dims)
        # cos(x) = sin(x + pi/2) keeps it to one transcendental per element
        # (phase-shift error <= half-ulp of the angle, same order as the
        # inherent f32 quantization of the angle itself).
        d = jax.lax.broadcasted_iota(jnp.int32, (1, embedding_dim), 1)
        is_sin = d < half_dim
        j = jnp.where(is_sin, d, d - half_dim).astype(jnp.float32)
        freq = jnp.exp(j * neg_scale)                       # (1, embedding_dim)
        phase = jnp.where(is_sin, jnp.float32(0.0), jnp.float32(math.pi / 2))
        val = jnp.sin(p * freq + phase) * row_mask          # (TILE, embedding_dim)
        if embedding_dim % 2 == 1:
            val = jnp.where(d < 2 * half_dim, val, jnp.float32(0.0))
        out_ref[...] = val.astype(out_ref.dtype)


def _choose_tile(n, embedding_dim, out_itemsize=4,
                 vmem_budget_bytes=8 * 1024 * 1024):
    """Rows per grid step, multiple of 8.

    Per-row VMEM footprint with double buffering:
      output block      : 2 * embedding_dim * out_itemsize
      positions block   : 2 * 512   ((tile,1) int32 lane-pads to (tile,128))
      f32 temporaries   : ~3 * embedding_dim * 4  (angles / sin / masked result)
    An 8 MiB total budget keeps the kernel under the scoped-VMEM defaults of
    v5e (16 MiB) and v6e/v7x (32 MiB) with margin, while landing output blocks
    in the ~1-4 MiB range (~85% of HBM write roofline in the tiling sweep).
    Blocks are balanced across grid steps so megacore sharding stays even.
    """
    per_row = 2 * embedding_dim * out_itemsize + 2 * 512 + 3 * embedding_dim * 4
    max_rows = max(8, (vmem_budget_bytes // per_row) // 8 * 8)
    n8 = ((n + 7) // 8) * 8
    if n8 <= max_rows:
        return n8
    num_blocks = pl.cdiv(n8, max_rows)
    return ((pl.cdiv(n8, num_blocks) + 7) // 8) * 8


def sinusoidal_positional_embedding(positions, embedding_dim, padding_idx=0,
                                    out_dtype=jnp.float32, tile=None):
    """positions: int array [bsz, seq_len] -> [bsz, seq_len, embedding_dim]."""
    if embedding_dim < 4:
        # half_dim - 1 == 0 for dim in {2,3}: the PyTorch module divides by
        # zero there too; fail loudly instead of emitting NaN/inf.
        raise ValueError("embedding_dim must be >= 4 (requires half_dim - 1 > 0)")

    positions = positions.astype(jnp.int32)
    bsz, seq_len = positions.shape
    n = bsz * seq_len
    half_dim = embedding_dim // 2

    if tile is None:
        tile = _choose_tile(n, embedding_dim, jnp.dtype(out_dtype).itemsize)
    assert tile % 8 == 0, "row tile must be a multiple of 8"

    grid = pl.cdiv(n, tile)                 # ragged last block handled by Pallas
    pos_flat = positions.reshape(n, 1)
    lane_aligned = (embedding_dim % 2 == 0) and (half_dim % 128 == 0)

    kernel = functools.partial(
        _sinusoidal_kernel,
        half_dim=half_dim,
        embedding_dim=embedding_dim,
        padding_idx=padding_idx,
        lane_aligned=lane_aligned,
    )

    out = pl.pallas_call(
        kernel,
        out_shape=jax.ShapeDtypeStruct((n, embedding_dim), out_dtype),
        grid_spec=pltpu.PrefetchScalarGridSpec(
            num_scalar_prefetch=0,
            grid=(grid,),
            in_specs=[pl.BlockSpec((tile, 1), lambda i: (i, 0))],        # positions
            out_specs=pl.BlockSpec((tile, embedding_dim), lambda i: (i, 0)),
        ),
        compiler_params=pltpu.CompilerParams(dimension_semantics=("parallel",)),
    )(pos_flat)

    # (n, dim) -> (bsz, seq, dim) is a copy-free row-major reshape.
    return out.reshape(bsz, seq_len, embedding_dim)


def _reference(positions, embedding_dim, padding_idx=0, init_size=1024):
    """Pure-JAX port of the PyTorch module (table build + gather) for checking."""
    max_pos = int(positions.max()) + 1
    num = max(init_size, max_pos)
    half_dim = embedding_dim // 2
    scale = math.log(10000.0) / (half_dim - 1)
    freq = jnp.exp(jnp.arange(half_dim, dtype=jnp.float32) * -scale)
    ang = jnp.arange(num, dtype=jnp.float32)[:, None] * freq[None, :]
    emb = jnp.concatenate([jnp.sin(ang), jnp.cos(ang)], axis=1)
    if embedding_dim % 2 == 1:
        emb = jnp.concatenate([emb, jnp.zeros((num, 1), jnp.float32)], axis=1)
    emb = emb.at[padding_idx].set(0.0)
    bsz, seq_len = positions.shape
    return emb[positions.reshape(-1)].reshape(bsz, seq_len, embedding_dim)


if __name__ == "__main__":
    key = jax.random.PRNGKey(0)
    k1, k2, k3, k4 = jax.random.split(key, 4)
    # Tolerance note: Mosaic's exp/sin/cos lowering differs from XLA's by a few
    # ULPs; the resulting absolute error scales with the position magnitude
    # (~1e-4 at positions ~300). atol=2e-3 gives headroom while still catching
    # any structural bug (those produce O(0.1..2) errors on values in [-1,1]).
    ATOL = 2e-3

    # 1) Small primary check (module's expected usage; single block,
    #    lane-select path since half_dim=16 < 128).
    bsz, seq_len, dim, padding_idx = 2, 8, 32, 0
    pos = jax.random.randint(k1, (bsz, seq_len), 1, 64, dtype=jnp.int32)
    pos = pos.at[0, -2:].set(padding_idx)            # pad tail of first sequence
    out = jax.block_until_ready(
        sinusoidal_positional_embedding(pos, dim, padding_idx))
    ref = _reference(pos, dim, padding_idx)
    assert out.shape == (bsz, seq_len, dim)
    assert jnp.allclose(out, ref, atol=ATOL), "mismatch vs reference (small case)"
    assert jnp.all(out[0, -2:] == 0.0), "padding rows must be exactly zero"

    # 2) Multi-step grid + ragged last block (tile forced small so n % tile != 0;
    #    exercises Pallas boundary masking that replaced the old pad + out[:n]).
    pos2 = jax.random.randint(k2, (4, 300), 1, 301, dtype=jnp.int32)
    pos2 = pos2.at[1, -5:].set(padding_idx)
    out2 = jax.block_until_ready(
        sinusoidal_positional_embedding(pos2, 64, padding_idx, tile=256))
    ref2 = _reference(pos2, 64, padding_idx)
    assert out2.shape == (4, 300, 64)
    assert jnp.allclose(out2, ref2, atol=ATOL), "mismatch vs reference (ragged multi-tile)"
    assert jnp.all(out2[1, -5:] == 0.0), "padding rows must be exactly zero"

    # 3) Lane-aligned path (half_dim == 128 -> two full-vreg column stores).
    pos3 = jax.random.randint(k3, (2, 16), 1, 33, dtype=jnp.int32)
    out3 = jax.block_until_ready(
        sinusoidal_positional_embedding(pos3, 256, padding_idx))
    ref3 = _reference(pos3, 256, padding_idx)
    assert jnp.allclose(out3, ref3, atol=ATOL), "mismatch vs reference (aligned case)"

    # 4) Odd embedding_dim (trailing zero column folded into the same store).
    pos4 = jax.random.randint(k4, (2, 8), 1, 17, dtype=jnp.int32)
    out4 = jax.block_until_ready(
        sinusoidal_positional_embedding(pos4, 33, padding_idx))
    ref4 = _reference(pos4, 33, padding_idx)
    assert jnp.allclose(out4, ref4, atol=ATOL), "mismatch vs reference (odd-dim case)"

    print("KERNEL_OK")
</pallas_src>

<mosaic_0001>
module attributes {stable_mosaic.version = 11 : i64} {
  func.func @_sinusoidal_kernel(%arg0: i32, %arg1: memref<16x1xi32, #tpu.memory_space<vmem>>, %arg2: memref<16x32xf32, #tpu.memory_space<vmem>>) attributes {dimension_semantics = [#tpu.dimension_semantics<parallel>], iteration_bounds = array<i64: 1>, scalar_prefetch = 0 : i64, scratch_operands = 0 : i64, tpu.core_type = #tpu.core_type<tc>, window_params = [{transform_indices = @transform_0, window_bounds = array<i64: 16, 1>}, {transform_indices = @transform_1, window_bounds = array<i64: 16, 32>}]} {
    %c0 = arith.constant 0 : index
    %c0_0 = arith.constant 0 : index
    %0 = vector.load %arg1[%c0, %c0_0] : memref<16x1xi32, #tpu.memory_space<vmem>>, vector<16x1xi32>
    %c0_i32 = arith.constant 0 : i32
    %1 = vector.broadcast %c0_i32 : i32 to vector<16x1xi32>
    %2 = arith.cmpi ne, %0, %1 : vector<16x1xi32>
    %3 = arith.extui %2 : vector<16x1xi1> to vector<16x1xi32>
    %4 = arith.sitofp %3 : vector<16x1xi32> to vector<16x1xf32>
    %5 = arith.sitofp %0 : vector<16x1xi32> to vector<16x1xf32>
    %6 = tpu.iota {dimensions = array<i32: 1>} : vector<1x32xi32>
    %c16_i32 = arith.constant 16 : i32
    %7 = vector.broadcast %c16_i32 : i32 to vector<1x32xi32>
    %8 = arith.cmpi slt, %6, %7 : vector<1x32xi32>
    %c16_i32_1 = arith.constant 16 : i32
    %9 = vector.broadcast %c16_i32_1 : i32 to vector<1x32xi32>
    %10 = arith.subi %6, %9 : vector<1x32xi32>
    %11 = arith.select %8, %6, %10 : vector<1x32xi1>, vector<1x32xi32>
    %12 = arith.sitofp %11 : vector<1x32xi32> to vector<1x32xf32>
    %cst = arith.constant -0.614022672 : f32
    %13 = vector.broadcast %cst : f32 to vector<1x32xf32>
    %14 = arith.mulf %12, %13 : vector<1x32xf32>
    %15 = math.exp %14 : vector<1x32xf32>
    %cst_2 = arith.constant 0.000000e+00 : f32
    %cst_3 = arith.constant 1.57079637 : f32
    %16 = vector.broadcast %cst_2 : f32 to vector<1x32xf32>
    %17 = vector.broadcast %cst_3 : f32 to vector<1x32xf32>
    %18 = arith.select %8, %16, %17 : vector<1x32xi1>, vector<1x32xf32>
    %19 = vector.broadcast %5 : vector<16x1xf32> to vector<16x32xf32>
    %20 = vector.broadcast %15 : vector<1x32xf32> to vector<16x32xf32>
    %21 = arith.mulf %19, %20 : vector<16x32xf32>
    %22 = vector.broadcast %18 : vector<1x32xf32> to vector<16x32xf32>
    %23 = arith.addf %21, %22 : vector<16x32xf32>
    %24 = math.sin %23 : vector<16x32xf32>
    %25 = vector.broadcast %4 : vector<16x1xf32> to vector<16x32xf32>
    %26 = arith.mulf %24, %25 : vector<16x32xf32>
    %c0_4 = arith.constant 0 : index
    %c0_5 = arith.constant 0 : index
    %27 = vector.load %arg2[%c0_4, %c0_5] : memref<16x32xf32, #tpu.memory_space<vmem>>, vector<16x32xf32>
    tpu.vector_store %arg2[%c0_4, %c0_5], %26 {strides = array<i32>} : memref<16x32xf32, #tpu.memory_space<vmem>>, vector<16x32xf32>,
    return
  }
  func.func @transform_0(%arg0: i32) -> (i32, i32) {
    %c0_i32 = arith.constant 0 : i32
    %c0_i32_0 = arith.constant 0 : i32
    return %arg0, %c0_i32 : i32, i32
  }
  func.func @transform_1(%arg0: i32) -> (i32, i32) {
    %c0_i32 = arith.constant 0 : i32
    %c0_i32_0 = arith.constant 0 : i32
    return %arg0, %c0_i32 : i32, i32
  }
}

</mosaic_0001>

<bundles_post_ra>
// kernel: tpu_custom_call.1
= control target key start
LH: loop header
LB: loop body
LE: loop exit
PB: predicated region body
PF: predicated region fallthrough
CT: control target
= control target key end

     0   :  { %v442_v2 = vmov 0   ;;  %s650_s0 = inlined_call_operand.vmem [shape: s32[16,1], index: 0, kind: input, shape index: {}]   ;;  %s651_s1 = inlined_call_operand.hbm [shape: f32[16,32], index: 1, kind: output, shape index: {}]  }
   0x1   :  { %v9_v0 = vld [vmem:[%s650_s0] sm:$0xff]  ;;  %v10_v1 = vld [vmem:[%s650_s0 + $0x8] sm:$0xff]  ;;  %407 = vset.pattern.permute.xlu0 %v442_v2  ;;  %408 = vset.pattern.permute.xlu1 %v442_v2 }
   0x2   :  { %v17_v3 = vcvt.s32.f32 %v9_v0  ;;  %vm11_vm0 = vcmp.ne.s32.totalorder %v9_v0, 0  ;;  %vm12_vm1 = vcmp.ne.s32.totalorder %v10_v1, 0 }
   0x3   :  { %6 = vsyncpa [#allocation3], 0  ;;  %v443_v4 = vmov 0.0   ;;  %v18_v8 = vcvt.s32.f32 %v10_v1  ;;  %v19_v9 = vlaneseq  ;;  %v444_v17 = vmov 1.5707964   ;;  %s451_s0 = smov [#allocation2]  }
   0x4   :  { %v386_v5 = vsel %vm11_vm0, 1.0, %v443_v4  ;;  %v387_v6 = vsel %vm12_vm1, 1.0, %v443_v4  ;;  %31 = vperm.xlu0 %407, %v17_v3   ;;  %v445_v41 = vmov 2102212464   ;;  %v446_v43 = vmov 920167782  }
   0x5   :  { %v409_v7 = vpack.i.bf16 %v387_v6, %v386_v5  ;;  %v20_v10 = vand.u32 127, %v19_v9  ;;  %v447_v46 = vmov 683565275   ;;  %v448_v49 = vmov 1326507024   ;;  %s372_s10 = sshll.u32 %s451_s0, 4  ;;  %s373_s10 = int_to_ptr.vmem [resolvable:$true] %s372_s10 }
   0x6   :  { %v449_v51 = vmov 2475754826   ;;  %v450_v55 = vmov 2131351028   ;;  %s374_s13 = sshll.u32 %s651_s1, 4  ;;  %s452_s14 = smov 128   ;;  %s375_s13 = int_to_ptr.hbm [resolvable:$true] %s374_s13 }
   0x7   :  { %410 = vperm.xlu1 %408, %v409_v7   ;;  %v388_v11 = vadd.s32 4294967280, %v20_v10  ;;  %vm21_vm2 = vcmp.lt.s32.totalorder %v20_v10, 16  ;;  %s453_s15 = smov 8  }
   0x8   :  { %v28_v18 = vsel %vm21_vm2, 0.0, %v444_v17 }
   0x9   :  { %v23_v12 = vsel %vm21_vm2, %v20_v10, %v388_v11 }
   0xa   :  { %v24_v13 = vcvt.s32.f32 %v23_v12 }
   0xc   :  { %36 = vperm.xlu0 %407, %v18_v8   ;;  %v25_v14 = vmul.f32 -0.6140227, %v24_v13 }
   0xe   :  { %v26_v15 = vmul.f32 1.442695, %v25_v14 }
  0x10   :  { %414 = vpow2.f32 %v26_v15 }
  0x16   :  { %v415_v16 = vpop.eup %414 }
  0x76   :  { %v32_v19 = vpop.permute.xlu0 %31 }
  0x77   :  { %v39_v20 = vmul.f32 %v415_v16, %v32_v19 }
  0x79   :  { %v472_v21 = vadd.f32 %v39_v20, %v28_v18 }
  0x7b   :  { %v46_v22 = vand.u32 2139095040, %v472_v21  ;;  %v43_v23 = vand.u32 2147483647, %v472_v21 }
  0x7d   :  { %v47_v24 = vshrl.u32 %v46_v22, 23  ;;  %v50_v25 = vand.u32 8388607, %v43_v23 }
  0x7e   :  { %v37_v26 = vpop.permute.xlu0 %36 }
  0x7f   :  { %v389_v27 = vadd.s32 4294967169, %v47_v24  ;;  %v40_v28 = vmul.f32 %v415_v16, %v37_v26  ;;  %v51_v29 = vor.u32 8388608, %v50_v25 }
  0x81   :  { %v53_v30 = vadd.s32 1, %v389_v27  ;;  %v478_v31 = vadd.f32 %v40_v28, %v28_v18  ;;  %v481_v33 = vshll.u32 %v51_v29, 8 }
  0x83   :  { %vm54_vm3 = vcmp.gt.s32.totalorder %v53_v30, 0  ;;  %v201_v32 = vand.u32 2139095040, %v478_v31  ;;  %v486_v39 = vand.u32 65535, %v481_v33  ;;  %v198_v40 = vand.u32 2147483647, %v478_v31 }
  0x84   :  { %v55_v34 = vsel %vm54_vm3, %v53_v30, 0  ;;  %v93_v25 = vshrl.u32 %v481_v33, 16 }
  0x85   :  { %v57_v35 = vand.u32 31, %v55_v34  ;;  %v202_v36 = vshrl.u32 %v201_v32, 23  ;;  %v483_v37 = vshrl.u32 %v55_v34, 5  ;;  %v504_v11 = vand.u32 8388607, %v198_v40 }
  0x87   :  { %v58_v38 = vsub.s32 32, %v57_v35  ;;  %v69_v42 = vshll.u32 %v445_v41, %v57_v35  ;;  %v72_v44 = vshll.u32 %v446_v43, %v57_v35  ;;  %v392_v45 = vadd.s32 4294967169, %v202_v36 }
  0x88   :  { %v60_v47 = vshll.u32 %v447_v46, %v57_v35  ;;  %v63_v53 = vshll.u32 %v449_v51, %v57_v35  ;;  %v66_v57 = vshll.u32 %v450_v55, %v57_v35  ;;  %vm78_vm4 = vcmp.lt.s32.totalorder %v483_v37, 4 }
  0x89   :  { %v70_v48 = vshrl.u32 %v446_v43, %v58_v38  ;;  %v73_v50 = vshrl.u32 %v448_v49, %v58_v38  ;;  %v61_v52 = vshrl.u32 %v449_v51, %v58_v38  ;;  %v208_v54 = vadd.s32 1, %v392_v45 }
  0x8a   :  { %v64_v56 = vshrl.u32 %v450_v55, %v58_v38  ;;  %v67_v58 = vshrl.u32 %v445_v41, %v58_v38  ;;  %v59_v62 = vshrl.u32 %v447_v46, %v58_v38  ;;  %vm75_vm6 = vcmp.lt.s32.totalorder %v483_v37, 1 }
  0x8b   :  { %v71_v59 = vor.u32 %v70_v48, %v69_v42  ;;  %v74_v60 = vor.u32 %v73_v50, %v72_v44  ;;  %v62_v61 = vor.u32 %v61_v52, %v60_v47  ;;  %vm209_vm5 = vcmp.gt.s32.totalorder %v208_v54, 0 }
  0x8c   :  { %v65_v63 = vor.u32 %v64_v56, %v63_v53  ;;  %v68_v0 = vor.u32 %v67_v58, %v66_v57  ;;  %v210_v4 = vsel %vm209_vm5, %v208_v54, 0  ;;  %vm77_vm7 = vcmp.lt.s32.totalorder %v483_v37, 3 }
  0x8d   :  { %v84_v1 = vsel %vm78_vm4, %v71_v59, 920167782  ;;  %v88_v3 = vsel %vm78_vm4, %v74_v60, 1326507024  ;;  %v499_v5 = vand.u32 31, %v210_v4  ;;  %v506_v12 = vshrl.u32 %v210_v4, 5 }
  0x8e   :  { %v80_v6 = vsel %vm78_vm4, %v68_v0, 2102212464  ;;  %v83_v7 = vsel %vm75_vm6, %v62_v61, %v65_v63  ;;  %v85_v8 = vsel %vm77_vm7, %v68_v0, %v84_v1  ;;  %v87_v9 = vsel %vm75_vm6, %v65_v63, %v68_v0 }
  0x8f   :  { %v89_v10 = vsel %vm77_vm7, %v71_v59, %v88_v3  ;;  %v509_v13 = vsub.s32 32, %v499_v5  ;;  %vm76_vm8 = vcmp.lt.s32.totalorder %v483_v37, 2  ;;  %v79_v14 = vsel %vm75_vm6, %v59_v62, %v62_v61 }
  0x90   :  { %v227_v15 = vshll.u32 %v446_v43, %v499_v5  ;;  %v81_v16 = vsel %vm77_vm7, %v65_v63, %v80_v6  ;;  %v86_v17 = vsel %vm76_vm8, %v83_v7, %v85_v8  ;;  %v90_v18 = vsel %vm76_vm8, %v87_v9, %v89_v10 }
  0x91   :  { %v225_v19 = vshrl.u32 %v446_v43, %v509_v13  ;;  %v228_v20 = vshrl.u32 %v448_v49, %v509_v13  ;;  %v94_v22 = vand.u32 65535, %v90_v18  ;;  %v95_v24 = vshrl.u32 %v90_v18, 16 }
  0x92   :  { %v116_v26 = vand.u32 65535, %v86_v17  ;;  %v117_v27 = vshrl.u32 %v86_v17, 16  ;;  %v224_v28 = vshll.u32 %v445_v41, %v499_v5  ;;  %vm233_vm9 = vcmp.lt.s32.totalorder %v506_v12, 4 }
  0x93   :  { %v229_v29 = vor.u32 %v228_v20, %v227_v15  ;;  %v97_v30 = vmul.u32 %v95_v24, %v486_v39  ;;  %v526_v32 = vsel %vm76_vm8, %v79_v14, %v81_v16  ;;  %v98_v34 = vmul.u32 %v94_v22, %v93_v25 }
  0x94   :  { %v119_v35 = vmul.u32 %v117_v27, %v486_v39  ;;  %v206_v36 = vor.u32 8388608, %v504_v11  ;;  %v226_v38 = vor.u32 %v225_v19, %v224_v28  ;;  %v96_v42 = vmul.u32 %v94_v22, %v486_v39 }
  0x95   :  { %v99_v43 = vmul.u32 %v95_v24, %v93_v25  ;;  %v100_v44 = vshll.u32 %v97_v30, 16  ;;  %v243_v45 = vsel %vm233_vm9, %v229_v29, 1326507024  ;;  %v101_v47 = vshrl.u32 %v97_v30, 16 }
  0x96   :  { %v118_v48 = vmul.u32 %v116_v26, %v486_v39  ;;  %v120_v49 = vmul.u32 %v116_v26, %v93_v25  ;;  %v102_v37 = vshll.u32 %v98_v34, 16  ;;  %v122_v52 = vshll.u32 %v119_v35, 16 }
  0x97   :  { %vm104_vm10 = vc.u32 %v96_v42, %v100_v44  ;;  %v106_v50 = vadd.s32 %v100_v44, %v96_v42  ;;  %v103_v53 = vshrl.u32 %v98_v34, 16  ;;  %v121_v56 = vmul.u32 %v117_v27, %v93_v25 }
  0x98   :  { %v105_v54 = vsel %vm104_vm10, 1, %v442_v2  ;;  %v124_v57 = vshll.u32 %v120_v49, 16  ;;  %vm126_vm12 = vc.u32 %v118_v48, %v122_v52  ;;  %v128_v59 = vadd.s32 %v122_v52, %v118_v48 }
  0x99   :  { %v107_v58 = vadd.s32 %v105_v54, %v99_v43  ;;  %vm108_vm11 = vc.u32 %v106_v50, %v102_v37  ;;  %v127_v61 = vsel %vm126_vm12, 1, %v442_v2  ;;  %v215_v39 = vshll.u32 %v447_v46, %v499_v5 }
  0x9a   :  { %v109_v60 = vsel %vm108_vm11, 1, %v442_v2  ;;  %v216_v62 = vshrl.u32 %v449_v51, %v509_v13  ;;  %v123_v0 = vshrl.u32 %v119_v35, 16  ;;  %v129_v1 = vadd.s32 %v127_v61, %v121_v56 }
  0x9b   :  { %v111_v63 = vadd.s32 %v109_v60, %v107_v58  ;;  %vm130_vm13 = vc.u32 %v128_v59, %v124_v57  ;;  %v218_v6 = vshll.u32 %v449_v51, %v499_v5  ;;  %v219_v7 = vshrl.u32 %v450_v55, %v509_v13 }
  0x9c   :  { %v131_v3 = vsel %vm130_vm13, 1, %v442_v2  ;;  %v542_v4 = vor.u32 %v216_v62, %v215_v39  ;;  %v221_v10 = vshll.u32 %v450_v55, %v499_v5  ;;  %v222_v11 = vshrl.u32 %v445_v41, %v509_v13 }
  0x9d   :  { %v112_v8 = vadd.s32 %v111_v63, %v101_v47  ;;  %v133_v9 = vadd.s32 %v131_v3, %v129_v1  ;;  %v239_v14 = vsel %vm233_vm9, %v226_v38, 920167782  ;;  %v125_v15 = vshrl.u32 %v120_v49, 16 }
  0x9e   :  { %v554_v16 = vor.u32 %v219_v7, %v218_v6  ;;  %vm230_vm14 = vcmp.lt.s32.totalorder %v506_v12, 1  ;;  %v223_v18 = vor.u32 %v222_v11, %v221_v10  ;;  %vm232_vm15 = vcmp.lt.s32.totalorder %v506_v12, 3 }
  0x9f   :  { %v557_v51 = vadd.s32 %v112_v8, %v103_v53  ;;  %v134_v17 = vadd.s32 %v133_v9, %v123_v0  ;;  %v560_v19 = vadd.s32 %v128_v59, %v124_v57  ;;  %v244_v55 = vsel %vm232_vm15, %v226_v38, %v243_v45 }
  0xa0   :  { %v238_v41 = vsel %vm230_vm14, %v542_v4, %v554_v16  ;;  %v568_v5 = vshll.u32 %v206_v36, 8  ;;  %v136_v22 = vmul.u32 %v481_v33, %v526_v32  ;;  %vm231_vm1 = vcmp.lt.s32.totalorder %v506_v12, 2 }
  0xa1   :  { %v135_v20 = vadd.s32 %v134_v17, %v125_v15  ;;  %vm138_vm0 = vc.u32 %v557_v51, %v560_v19  ;;  %v240_v24 = vsel %vm232_vm15, %v223_v18, %v239_v14  ;;  %v242_v25 = vsel %vm230_vm14, %v554_v16, %v223_v18 }
  0xa2   :  { %v241_v27 = vsel %vm231_vm1, %v238_v41, %v240_v24  ;;  %v245_v28 = vsel %vm231_vm1, %v242_v25, %v244_v55  ;;  %v247_v33 = vand.u32 65535, %v568_v5  ;;  %v248_v29 = vshrl.u32 %v568_v5, 16 }
  0xa3   :  { %v139_v26 = vadd.s32 1, %v135_v20  ;;  %v249_v30 = vand.u32 65535, %v245_v28  ;;  %v250_v32 = vshrl.u32 %v245_v28, 16  ;;  %v271_v34 = vand.u32 65535, %v241_v27 }
  0xa4   :  { %v272_v36 = vshrl.u32 %v241_v27, 16  ;;  %v214_v7 = vshrl.u32 %v447_v46, %v509_v13  ;;  %v235_v8 = vsel %vm233_vm9, %v223_v18, 2102212464  ;;  %vm45_vm10 = vcmp.lt.s32.totalorder %v472_v21, 0 }
  0xa5   :  { %v140_v35 = vsel %vm138_vm0, %v139_v26, %v135_v20  ;;  %v252_v42 = vmul.u32 %v250_v32, %v247_v33  ;;  %v253_v43 = vmul.u32 %v249_v30, %v248_v29  ;;  %v275_v45 = vmul.u32 %v271_v34, %v248_v29 }
  0xa6   :  { %v141_v38 = vadd.s32 %v140_v35, %v136_v22  ;;  %v274_v44 = vmul.u32 %v272_v36, %v247_v33  ;;  %v251_v48 = vmul.u32 %v249_v30, %v247_v33  ;;  %v254_v37 = vmul.u32 %v250_v32, %v248_v29 }
  0xa7   :  { %v255_v49 = vshll.u32 %v252_v42, 16  ;;  %v273_v50 = vmul.u32 %v271_v34, %v247_v33  ;;  %v257_v54 = vshll.u32 %v253_v43, 16  ;;  %v279_v58 = vshll.u32 %v275_v45, 16 }
  0xa8   :  { %v142_v47 = vadd.s32 536870912, %v141_v38  ;;  %v277_v52 = vshll.u32 %v274_v44, 16  ;;  %v276_v39 = vmul.u32 %v272_v36, %v248_v29  ;;  %v256_v1 = vshrl.u32 %v252_v42, 16 }
  0xa9   :  { %vm259_vm2 = vc.u32 %v251_v48, %v255_v49  ;;  %v261_v56 = vadd.s32 %v255_v49, %v251_v48  ;;  %v258_v11 = vshrl.u32 %v253_v43, 16  ;;  %v278_v15 = vshrl.u32 %v274_v44, 16 }
  0xaa   :  { %v586_v53 = vshrl.u32 %v142_v47, 30  ;;  %v260_v57 = vsel %vm259_vm2, 1, %v442_v2  ;;  %vm281_vm3 = vc.u32 %v273_v50, %v277_v52  ;;  %v283_v59 = vadd.s32 %v277_v52, %v273_v50 }
  0xab   :  { %v262_v61 = vadd.s32 %v260_v57, %v254_v37  ;;  %vm263_vm4 = vc.u32 %v261_v56, %v257_v54  ;;  %v282_v63 = vsel %vm281_vm3, 1, %v442_v2  ;;  %v234_v55 = vsel %vm230_vm14, %v214_v7, %v542_v4 }
  0xac   :  { %v144_v60 = vshll.u32 %v586_v53, 30  ;;  %v264_v62 = vsel %vm263_vm4, 1, %v442_v2  ;;  %vm285_vm5 = vc.u32 %v283_v59, %v279_v58  ;;  %v284_v6 = vadd.s32 %v282_v63, %v276_v39 }
  0xad   :  { %v266_v3 = vadd.s32 %v264_v62, %v262_v61  ;;  %v286_v9 = vsel %vm285_vm5, 1, %v442_v2  ;;  %v236_v46 = vsel %vm232_vm15, %v554_v16, %v235_v8  ;;  %v280_v18 = vshrl.u32 %v275_v45, 16 }
  0xae   :  { %v145_v0 = vsub.s32 %v141_v38, %v144_v60  ;;  %v288_v17 = vadd.s32 %v286_v9, %v284_v6  ;;  %v287_v2 = vadd.s32 %v283_v59, %v279_v58  ;;  %v237_v25 = vsel %vm231_vm1, %v234_v55, %v236_v46 }
  0xaf   :  { %v267_v14 = vadd.s32 %v266_v3, %v256_v1  ;;  %v291_v4 = vmul.u32 %v568_v5, %v237_v25  ;;  %v137_v33 = vadd.s32 %v560_v19, %v557_v51  ;;  %vm614_vm11 = vcmp.le.f32.partialorder %v43_v23, 0.7853982 }
  0xb0   :  { %vm146_vm6 = vcmp.lt.s32.totalorder %v145_v0, 0  ;;  %v147_v10 = vsub.s32 0, %v145_v0  ;;  %v289_v22 = vadd.s32 %v288_v17, %v278_v15  ;;  %v167_v56 = vsub.s32 4, %v586_v53 }
  0xb1   :  { %v268_v13 = vadd.s32 %v267_v14, %v258_v11  ;;  %vm200_vm15 = vcmp.lt.s32.totalorder %v478_v31, 0  ;;  %vm186_vm1 = vweird.f32 %v472_v21  ;;  %vm629_vm2 = vcmp.le.f32.partialorder %v198_v40, 0.7853982 }
  0xb2   :  { %v148_v41 = vsel %vm146_vm6, %v147_v10, %v145_v0  ;;  %v290_v26 = vadd.s32 %v289_v22, %v280_v18  ;;  %v168_v39 = vsel %vm45_vm10, %v167_v56, %v586_v53  ;;  %vm365_vm3 = vcmask 261120  }
  0xb3   :  { %v149_v20 = vclz %v148_v41  ;;  %vm293_vm7 = vc.u32 %v268_v13, %v287_v2  ;;  %v170_v6 = vsel %vm614_vm11, 0, %v168_v39 }
  0xb4   :  { %v294_v27 = vadd.s32 1, %v290_v26  ;;  %v187_v17 = vadd.s32 3, %v170_v6 }
  0xb5   :  { %v390_v24 = vadd.s32 4294967294, %v149_v20 }
  0xb6   :  { %v295_v30 = vsel %vm293_vm7, %v294_v27, %v290_v26  ;;  %v188_v22 = vand.u32 3, %v187_v17  ;;  %v411_v27 = vpop.permute.xlu1 %410  ;;  %vm341_vm7 = vweird.f32 %v478_v31 }
  0xb7   :  { %vm391_vm8 = vcmp.lt.s32.totalorder %v390_v24, 0  ;;  %v296_v32 = vadd.s32 %v295_v30, %v291_v4 }
  0xb8   :  { %v152_v28 = vsel %vm391_vm8, 0, %v390_v24  ;;  %vm190_vm13 = vcmp.eq.s32.totalorder %v188_v22, 0  ;;  %vm193_vm14 = vcmp.eq.s32.totalorder %v188_v22, 2  ;;  %vm189_vm0 = vcmp.lt.s32.totalorder %v188_v22, 2 }
  0xb9   :  { %v153_v16 = vsub.s32 32, %v152_v28  ;;  %v157_v29 = vsub.s32 4294967266, %v152_v28  ;;  %v154_v34 = vshll.u32 %v145_v0, %v152_v28  ;;  %v297_v38 = vadd.s32 536870912, %v296_v32 }
  0xba   :  { %v292_v0 = vadd.s32 %v287_v2, %v268_v13 }
  0xbb   :  { %v155_v35 = vshrl.u32 %v137_v33, %v153_v16  ;;  %v158_v36 = vadd.s32 127, %v157_v29  ;;  %v608_v43 = vshrl.u32 %v297_v38, 30  ;;  %v412_v16 = vunpack.i.l.bf16 %v411_v27 }
  0xbd   :  { %v156_v12 = vor.u32 %v155_v35, %v154_v34  ;;  %v159_v42 = vshll.u32 %v158_v36, 23  ;;  %v299_v45 = vshll.u32 %v608_v43, 30  ;;  %v322_v38 = vsub.s32 4, %v608_v43 }
  0xbf   :  { %v160_v44 = vor.u32 4788187, %v159_v42  ;;  %v163_v5 = vcvt.s32.f32 %v156_v12  ;;  %v300_v48 = vsub.s32 %v296_v32, %v299_v45  ;;  %v323_v40 = vsel %vm200_vm15, %v322_v38, %v608_v43 }
  0xc0   :  { %v413_v43 = vunpack.i.h.bf16 %v411_v27 }
  0xc1   :  { %v161_v47 = vand.u32 2147483647, %v160_v44  ;;  %vm301_vm9 = vcmp.lt.s32.totalorder %v300_v48, 0  ;;  %v302_v51 = vsub.s32 0, %v300_v48 }
  0xc3   :  { %v164_v49 = vmul.f32 %v163_v5, %v161_v47  ;;  %v303_v37 = vsel %vm301_vm9, %v302_v51, %v300_v48 }
  0xc4   :  { %v304_v54 = vclz %v303_v37 }
  0xc5   :  { %v165_v19 = vxor.u32 2147483648, %v164_v49 }
  0xc6   :  { %v393_v59 = vadd.s32 4294967294, %v304_v54 }
  0xc7   :  { %v166_v52 = vsel %vm45_vm10, %v165_v19, %v164_v49 }
  0xc8   :  { %v169_v57 = vsel %vm614_vm11, %v472_v21, %v166_v52  ;;  %vm394_vm12 = vcmp.lt.s32.totalorder %v393_v59, 0 }
  0xc9   :  { %v171_v58 = vmul.f32 %v169_v57, %v169_v57  ;;  %v307_v62 = vsel %vm394_vm12, 0, %v393_v59 }
  0xca   :  { %v308_v1 = vsub.s32 32, %v307_v62  ;;  %v312_v3 = vsub.s32 4294967266, %v307_v62  ;;  %v309_v10 = vshll.u32 %v300_v48, %v307_v62  ;;  %v325_v48 = vsel %vm629_vm2, 0, %v323_v40 }
  0xcb   :  { %v172_v60 = vmul.f32 -0.001358992, %v171_v58  ;;  %v179_v61 = vmul.f32 -0.00019511016, %v171_v58  ;;  %v342_v50 = vadd.s32 3, %v325_v48 }
  0xcc   :  { %v310_v9 = vshrl.u32 %v292_v0, %v308_v1  ;;  %v313_v11 = vadd.s32 127, %v312_v3 }
  0xcd   :  { %v173_v23 = vadd.f32 0.041655596, %v172_v60  ;;  %v180_v63 = vadd.f32 0.008332121, %v179_v61 }
  0xce   :  { %v311_v41 = vor.u32 %v310_v9, %v309_v10  ;;  %v314_v55 = vshll.u32 %v313_v11, 23 }
  0xcf   :  { %v174_v7 = vmul.f32 %v173_v23, %v171_v58  ;;  %v181_v8 = vmul.f32 %v180_v63, %v171_v58 }
  0xd0   :  { %v315_v20 = vor.u32 4788187, %v314_v55  ;;  %v318_v24 = vcvt.s32.f32 %v311_v41 }
  0xd1   :  { %v175_v14 = vadd.f32 -0.4999988, %v174_v7  ;;  %v182_v15 = vadd.f32 -0.16666654, %v181_v8 }
  0xd2   :  { %v316_v2 = vand.u32 2147483647, %v315_v20 }
  0xd3   :  { %v176_v53 = vmul.f32 %v175_v14, %v171_v58  ;;  %v183_v46 = vmul.f32 %v182_v15, %v171_v58  ;;  %v343_v58 = vand.u32 3, %v342_v50 }
  0xd4   :  { %v319_v28 = vmul.f32 %v318_v24, %v316_v2 }
  0xd5   :  { %v177_v18 = vadd.f32 1.0, %v176_v53  ;;  %v184_v13 = vadd.f32 1.0, %v183_v46  ;;  %vm345_vm4 = vcmp.eq.s32.totalorder %v343_v58, 0  ;;  %vm348_vm5 = vcmp.eq.s32.totalorder %v343_v58, 2 }
  0xd6   :  { %v320_v33 = vxor.u32 2147483648, %v319_v28  ;;  %vm344_vm6 = vcmp.lt.s32.totalorder %v343_v58, 2 }
  0xd7   :  { %v185_v25 = vmul.f32 %v184_v13, %v169_v57  ;;  %v194_v26 = vxor.u32 2147483648, %v177_v18 }
  0xd8   :  { %v321_v35 = vsel %vm200_vm15, %v320_v33, %v319_v28 }
  0xd9   :  { %v191_v4 = vxor.u32 2147483648, %v185_v25  ;;  %v195_v30 = vsel %vm193_vm14, %v194_v26, %v185_v25  ;;  %v324_v12 = vsel %vm629_vm2, %v478_v31, %v321_v35 }
  0xda   :  { %v326_v42 = vmul.f32 %v324_v12, %v324_v12 }
  0xdb   :  { %v192_v29 = vsel %vm190_vm13, %v177_v18, %v191_v4 }
  0xdc   :  { %v196_v32 = vsel %vm189_vm0, %v192_v29, %v195_v30  ;;  %v327_v44 = vmul.f32 -0.001358992, %v326_v42  ;;  %v334_v45 = vmul.f32 -0.00019511016, %v326_v42 }
  0xdd   :  { %v197_v36 = vsel %vm186_vm1, nan, %v196_v32 }
  0xde   :  { %v363_v21 = vmul.f32 %v412_v16, %v197_v36  ;;  %v328_v47 = vadd.f32 0.041655596, %v327_v44  ;;  %v335_v5 = vadd.f32 0.008332121, %v334_v45 }
  0xe0   :  { %366 = vst.msk [vmem:[#allocation2] sm:$0xff] %vm365_vm3, %v363_v21  ;;  %v329_v49 = vmul.f32 %v328_v47, %v326_v42  ;;  %v336_v51 = vmul.f32 %v335_v5, %v326_v42 }
  0xe2   :  { %v330_v19 = vadd.f32 -0.4999988, %v329_v49  ;;  %v337_v37 = vadd.f32 -0.16666654, %v336_v51 }
  0xe4   :  { %v331_v52 = vmul.f32 %v330_v19, %v326_v42  ;;  %v338_v54 = vmul.f32 %v337_v37, %v326_v42 }
  0xe6   :  { %v332_v56 = vadd.f32 1.0, %v331_v52  ;;  %v339_v57 = vadd.f32 1.0, %v338_v54 }
  0xe8   :  { %v340_v59 = vmul.f32 %v339_v57, %v324_v12  ;;  %v349_v60 = vxor.u32 2147483648, %v332_v56 }
  0xea   :  { %v346_v61 = vxor.u32 2147483648, %v340_v59  ;;  %v350_v62 = vsel %vm348_vm5, %v349_v60, %v340_v59 }
  0xec   :  { %v347_v39 = vsel %vm345_vm4, %v332_v56, %v346_v61 }
  0xed   :  { %v351_v23 = vsel %vm344_vm6, %v347_v39, %v350_v62 }
  0xee   :  { %v352_v63 = vsel %vm341_vm7, nan, %v351_v23 }
  0xef   :  { %v364_v0 = vmul.f32 %v413_v43, %v352_v63 }
  0xf1   :  { %367 = vst.msk [vmem:[#allocation2 + $0x8] sm:$0xff] %vm365_vm3, %v364_v0 }
  0xf2   :  { %380 = dma.vmem_to_hbm [thread:$0]  %s373_s10, 256, %s375_s13, [#allocation3], %s452_s14, %s452_s14, %s453_s15  }
  0xf3   :  { %440 = dma.done.wait [#allocation3], 256  }
  0xf4   :  { %441 = vsyncadd [#allocation3], 4294967040 }
  0xf5   :  { %385 = vsyncpa [#allocation3], 1 }

</bundles_post_ra>
